<compile_context>
chip_gen: v7x
topology: tpu7x:2x2x1
jax: 0.10.0
libtpu: 0.0.40
codegen_flags: <defaults>
</compile_context>

<pallas_src>
import functools
import math

import jax
import jax.numpy as jnp
from jax.experimental import pallas as pl
from jax.experimental.pallas import tpu as pltpu


def _upsample_kernel_fused(x_ref, w_ref, b_ref, o_ref, *, rows, width, cout):
    # x_ref: (1, rows*width, C_in)
    # w_ref: (C_in, 4*C_out)   columns ordered (kh, kw, o)
    # b_ref: (1, 4*C_out) float32
    # o_ref: (1, rows, 2, width, 2*C_out)
    n = 2 * cout
    x = x_ref[0]                                            # (rows*width, C_in)
    acc = jnp.dot(x, w_ref[...], preferred_element_type=jnp.float32)
    acc = acc + b_ref[...]                                  # (rows*width, 4*C_out) f32
    for kh in range(2):                                     # unrolled
        part = acc[:, kh * n:(kh + 1) * n]                  # lane-aligned (n % 128 == 0)
        # Leading-dim regroup (rows*width, n) -> (rows, width, n): free relayout
        # because width % 8 == 0 (sublane granularity).
        o_ref[0, :, kh, :, :] = part.reshape(rows, width, n).astype(o_ref.dtype)


def _upsample_kernel_split(x_ref, w_ref, b_ref, o_ref, *, rows, width, cout):
    # x_ref: (1, rows*width, C_in)
    # w_ref: (2, C_in, 2*C_out)  per row-tap kh, columns ordered (kw, o)
    # b_ref: (2, 1, 2*C_out) float32
    # o_ref: (1, rows, 2, width, 2*C_out)
    n = 2 * cout
    x = x_ref[0]
    for kh in range(2):                                     # 2 MXU matmuls sharing x in vregs
        acc = jnp.dot(x, w_ref[kh], preferred_element_type=jnp.float32) + b_ref[kh]
        o_ref[0, :, kh, :, :] = acc.reshape(rows, width, n).astype(o_ref.dtype)


def _pad(v, m):
    return -(-v // m) * m


def _block_bytes(r, W, Cin, Cout, in_bytes, out_bytes, fused):
    """Approximate VMEM footprint of one grid step: double-buffered pipeline
    blocks (x, out, weights, bias) + in-kernel f32 accumulator temporaries."""
    lane, sub = 128, 8
    tokens = r * W                                          # multiple of 8 (W % 8 == 0)
    n_pad = _pad(2 * Cout, lane)
    nw = 4 * Cout if fused else 2 * Cout
    nw_pad = _pad(nw, lane)
    x_blk = tokens * _pad(Cin, lane) * in_bytes
    o_blk = r * 2 * _pad(W, sub) * n_pad * out_bytes
    w_blk = (1 if fused else 2) * _pad(Cin, sub) * nw_pad * in_bytes
    b_blk = (1 if fused else 2) * sub * nw_pad * 4
    acc = (1 if fused else 2) * tokens * nw_pad * 4         # f32 matmul accumulators
    return 2 * (x_blk + o_blk + w_blk + b_blk) + acc


def _pick_rows(B, H, W, Cin, Cout, in_bytes, out_bytes, fused, budget_bytes):
    """Largest divisor r of H whose grid-step VMEM footprint fits the budget;
    keeps >= 2 grid steps when possible (megacore / both v7x TensorCores)."""
    divisors = [d for d in range(1, H + 1) if H % d == 0]
    r = 1
    for d in divisors:
        if _block_bytes(d, W, Cin, Cout, in_bytes, out_bytes, fused) <= budget_bytes:
            r = d
    if B * (H // r) < 2 and r > 1:
        smaller = [d for d in divisors if d < r]
        if smaller:
            r = smaller[-1]
    return r


def _vmem_capacity_bytes():
    try:
        return int(pltpu.get_tpu_info().vmem_capacity_bytes)
    except Exception:
        return 64 * 1024 * 1024       # conservative default (v7x per-TensorCore VMEM)


def upsample_forward(x, weight, bias, *, mxu_input_dtype=None):
    """x: (B, L, C_in); weight: (C_in, C_out, 2, 2) (PyTorch ConvTranspose2d layout);
    bias: (C_out,). Returns (B, 4L, C_out), matching Upsample.forward.

    mxu_input_dtype: optionally cast x / weights fed to the MXU (e.g. jnp.bfloat16
    on v7x, where f32 MXU rate is ~1/4); accumulation stays f32 and the output
    keeps x's dtype, but numerics change slightly (off by default).
    """
    B, L, Cin = x.shape
    H = round(math.sqrt(L))
    W = H
    assert H * W == L, "L must be a perfect square"
    Cout = weight.shape[1]
    if W % 8 != 0:
        # TODO(synk): widths not a multiple of the 8-sublane granularity need a
        # masked / relayout store path; not implemented here.
        raise NotImplementedError("upsample_forward requires W % 8 == 0")

    out_dtype = x.dtype
    in_dtype = mxu_input_dtype if mxu_input_dtype is not None else x.dtype
    in_bytes = jnp.dtype(in_dtype).itemsize
    out_bytes = jnp.dtype(out_dtype).itemsize

    fused = (2 * Cout) % 128 == 0

    if fused:
        # (C_in, C_out, 2, 2) -> (C_in, 4*C_out), columns ordered (kh, kw, o).
        w_taps = jnp.transpose(weight, (0, 2, 3, 1)).reshape(Cin, 4 * Cout).astype(in_dtype)
        b_taps = jnp.tile(bias.astype(jnp.float32), 4).reshape(1, 4 * Cout)
        w_spec = pl.BlockSpec((Cin, 4 * Cout), lambda b, j: (0, 0))
        b_spec = pl.BlockSpec((1, 4 * Cout), lambda b, j: (0, 0))
    else:
        # (C_in, C_out, 2, 2) -> (2, C_in, 2*C_out); plane kh has columns (kw, o).
        # TODO(synk): for 2*C_out < 128 a lane-dense (B, H, 2, 2*W*C_out) output
        # layout would avoid masked vst.msk stores but needs a sublane->lane
        # relayout of the accumulator; kept on the simple (correct) path here.
        w_taps = jnp.transpose(weight, (2, 0, 3, 1)).reshape(2, Cin, 2 * Cout).astype(in_dtype)
        b_taps = jnp.tile(bias.astype(jnp.float32), 4).reshape(2, 1, 2 * Cout)
        w_spec = pl.BlockSpec((2, Cin, 2 * Cout), lambda b, j: (0, 0, 0))
        b_spec = pl.BlockSpec((2, 1, 2 * Cout), lambda b, j: (0, 0, 0))

    x_in = x.astype(in_dtype) if in_dtype != x.dtype else x

    # Generation-aware VMEM budgeting (weight/bias second pipeline buffers are
    # simply counted in the budget rather than disabled).
    vmem_cap = _vmem_capacity_bytes()
    if vmem_cap >= 100 * 1024 * 1024:      # v5e / v6e: 128 MiB physical VMEM
        budget = 48 * 1024 * 1024
        vmem_limit = 64 * 1024 * 1024
    else:                                  # v7x: 64 MiB per TensorCore
        budget = 26 * 1024 * 1024
        vmem_limit = 32 * 1024 * 1024

    r = _pick_rows(B, H, W, Cin, Cout, in_bytes, out_bytes, fused, budget)
    needed = _block_bytes(r, W, Cin, Cout, in_bytes, out_bytes, fused)
    headroom = 8 * 1024 * 1024
    if needed + headroom > vmem_limit:
        # Fallback for very wide W / large channel counts where even r == 1
        # exceeds the default budget: raise the limit (bounded by capacity).
        vmem_limit = max(vmem_limit, min(needed + headroom, vmem_cap - headroom))

    grid = (B, H // r)
    kernel_fn = _upsample_kernel_fused if fused else _upsample_kernel_split
    kernel = functools.partial(kernel_fn, rows=r, width=W, cout=Cout)

    cost = pl.CostEstimate(
        flops=2 * B * L * Cin * 4 * Cout,
        transcendentals=0,
        bytes_accessed=(in_bytes * B * L * Cin
                        + out_bytes * B * 4 * L * Cout
                        + in_bytes * 4 * Cin * Cout
                        + 4 * 4 * Cout),
    )

    y5 = pl.pallas_call(
        kernel,
        out_shape=jax.ShapeDtypeStruct((B, H, 2, W, 2 * Cout), out_dtype),
        grid=grid,
        in_specs=[
            pl.BlockSpec((1, r * W, Cin), lambda b, j: (b, j, 0)),
            w_spec,
            b_spec,
        ],
        out_specs=pl.BlockSpec((1, r, 2, W, 2 * Cout), lambda b, j: (b, j, 0, 0, 0)),
        compiler_params=pltpu.CompilerParams(
            dimension_semantics=("parallel", "parallel"),
            vmem_limit_bytes=vmem_limit,
        ),
        cost_estimate=cost,
    )(x_in, w_taps, b_taps)

    # Row-major flatten of (H, 2, W, 2*C_out) is exactly ((2h+kh)*2W + 2w+kw, o),
    # so this reshape is free (no transpose, no extra HBM pass).
    return y5.reshape(B, 4 * L, Cout)


def _reference_upsample(x, weight, bias):
    """Pure-JAX reference matching PyTorch ConvTranspose2d(k=2, s=2) semantics."""
    B, L, Cin = x.shape
    H = W = round(math.sqrt(L))
    Cout = weight.shape[1]
    xhw = x.reshape(B, H, W, Cin)
    # out[b, 2h+kh, 2w+kw, o] = sum_c xhw[b,h,w,c] * weight[c,o,kh,kw] + bias[o]
    y = jnp.einsum("bhwc,cokl->bhkwlo", xhw, weight, precision="highest") + bias
    return y.reshape(B, 2 * H * 2 * W, Cout)


if __name__ == "__main__":
    key = jax.random.PRNGKey(0)

    # Case 1 exercises the fused single-matmul path (2*C_out % 128 == 0);
    # case 2 exercises the per-kh split path (small C_out).
    for (B, H, Cin, Cout) in [(2, 8, 32, 64), (2, 8, 16, 8)]:
        W = H
        L = H * W
        k_x, k_w, k_b, key = jax.random.split(key, 4)
        x = jax.random.normal(k_x, (B, L, Cin), dtype=jnp.float32)
        # ConvTranspose2d weight layout: (C_in, C_out, 2, 2).
        weight = jax.random.normal(k_w, (Cin, Cout, 2, 2), dtype=jnp.float32) * 0.1
        bias = jax.random.normal(k_b, (Cout,), dtype=jnp.float32) * 0.1

        out = jax.block_until_ready(upsample_forward(x, weight, bias))
        ref = _reference_upsample(x, weight, bias)
        assert out.shape == (B, 4 * L, Cout)
        assert jnp.allclose(out, ref, atol=1e-5, rtol=1e-5), "mismatch vs reference"

    print("KERNEL_OK")
</pallas_src>

<mosaic_0001>
module attributes {stable_mosaic.version = 11 : i64} {
  func.func @_upsample_kernel_fused(%arg0: i32, %arg1: i32, %arg2: memref<1x64x32xf32, #tpu.memory_space<vmem>>, %arg3: memref<32x256xf32, #tpu.memory_space<vmem>>, %arg4: memref<1x256xf32, #tpu.memory_space<vmem>>, %arg5: memref<1x8x2x8x128xf32, #tpu.memory_space<vmem>>) attributes {dimension_semantics = [#tpu.dimension_semantics<parallel>, #tpu.dimension_semantics<parallel>], iteration_bounds = array<i64: 2, 1>, scalar_prefetch = 0 : i64, scratch_operands = 0 : i64, tpu.core_type = #tpu.core_type<tc>, window_params = [{transform_indices = @transform_0, window_bounds = array<i64: 1, 64, 32>}, {pipeline_mode = #tpu.pipeline_mode<synchronous>, transform_indices = @transform_1, window_bounds = array<i64: 32, 256>}, {pipeline_mode = #tpu.pipeline_mode<synchronous>, transform_indices = @transform_2, window_bounds = array<i64: 1, 256>}, {transform_indices = @transform_3, window_bounds = array<i64: 1, 8, 2, 8, 128>}]} {
    %c0 = arith.constant 0 : index
    %c0_0 = arith.constant 0 : index
    %c0_1 = arith.constant 0 : index
    %0 = vector.load %arg2[%c0, %c0_0, %c0_1] : memref<1x64x32xf32, #tpu.memory_space<vmem>>, vector<1x64x32xf32>
    %1 = vector.shape_cast %0 : vector<1x64x32xf32> to vector<64x32xf32>
    %c0_2 = arith.constant 0 : index
    %c0_3 = arith.constant 0 : index
    %2 = vector.load %arg3[%c0_2, %c0_3] : memref<32x256xf32, #tpu.memory_space<vmem>>, vector<32x256xf32>
    %cst = arith.constant dense<0.000000e+00> : vector<64x256xf32>
    %3 = tpu.matmul %1, %2, %cst {dimension_numbers = #tpu.dot_dimension_numbers<[1], [0], [0], [1], [0, 0, 1, 1], [], []>} : vector<64x32xf32>, vector<32x256xf32>, vector<64x256xf32> -> vector<64x256xf32>
    %c0_4 = arith.constant 0 : index
    %c0_5 = arith.constant 0 : index
    %4 = vector.load %arg4[%c0_4, %c0_5] : memref<1x256xf32, #tpu.memory_space<vmem>>, vector<1x256xf32>
    %5 = vector.broadcast %4 : vector<1x256xf32> to vector<64x256xf32>
    %6 = arith.addf %3, %5 : vector<64x256xf32>
    %7 = vector.extract_strided_slice %6 {offsets = [0, 0], sizes = [64, 128], strides = [1, 1]} : vector<64x256xf32> to vector<64x128xf32>
    %8 = vector.shape_cast %7 : vector<64x128xf32> to vector<8x8x128xf32>
    %c0_6 = arith.constant 0 : index
    %c0_7 = arith.constant 0 : index
    %c0_8 = arith.constant 0 : index
    %c0_9 = arith.constant 0 : index
    %c0_10 = arith.constant 0 : index
    %9 = vector.load %arg5[%c0_6, %c0_7, %c0_8, %c0_9, %c0_10] : memref<1x8x2x8x128xf32, #tpu.memory_space<vmem>>, vector<1x8x1x8x128xf32>
    %10 = vector.shape_cast %9 : vector<1x8x1x8x128xf32> to vector<8x8x128xf32>
    %11 = vector.shape_cast %8 : vector<8x8x128xf32> to vector<1x8x1x8x128xf32>
    tpu.vector_store %arg5[%c0_6, %c0_7, %c0_8, %c0_9, %c0_10], %11 {strides = array<i32>} : memref<1x8x2x8x128xf32, #tpu.memory_space<vmem>>, vector<1x8x1x8x128xf32>,
    %12 = vector.extract_strided_slice %6 {offsets = [0, 128], sizes = [64, 128], strides = [1, 1]} : vector<64x256xf32> to vector<64x128xf32>
    %13 = vector.shape_cast %12 : vector<64x128xf32> to vector<8x8x128xf32>
    %c0_11 = arith.constant 0 : index
    %c0_12 = arith.constant 0 : index
    %c1 = arith.constant 1 : index
    %c0_13 = arith.constant 0 : index
    %c0_14 = arith.constant 0 : index
    %14 = vector.load %arg5[%c0_11, %c0_12, %c1, %c0_13, %c0_14] : memref<1x8x2x8x128xf32, #tpu.memory_space<vmem>>, vector<1x8x1x8x128xf32>
    %15 = vector.shape_cast %14 : vector<1x8x1x8x128xf32> to vector<8x8x128xf32>
    %16 = vector.shape_cast %13 : vector<8x8x128xf32> to vector<1x8x1x8x128xf32>
    tpu.vector_store %arg5[%c0_11, %c0_12, %c1, %c0_13, %c0_14], %16 {strides = array<i32>} : memref<1x8x2x8x128xf32, #tpu.memory_space<vmem>>, vector<1x8x1x8x128xf32>,
    return
  }
  func.func @transform_0(%arg0: i32, %arg1: i32) -> (i32, i32, i32) {
    %c0_i32 = arith.constant 0 : i32
    %c0_i32_0 = arith.constant 0 : i32
    return %arg0, %arg1, %c0_i32 : i32, i32, i32
  }
  func.func @transform_1(%arg0: i32, %arg1: i32) -> (i32, i32) {
    %c0_i32 = arith.constant 0 : i32
    %c0_i32_0 = arith.constant 0 : i32
    %c0_i32_1 = arith.constant 0 : i32
    return %c0_i32, %c0_i32_0 : i32, i32
  }
  func.func @transform_2(%arg0: i32, %arg1: i32) -> (i32, i32) {
    %c0_i32 = arith.constant 0 : i32
    %c0_i32_0 = arith.constant 0 : i32
    %c0_i32_1 = arith.constant 0 : i32
    return %c0_i32, %c0_i32_0 : i32, i32
  }
  func.func @transform_3(%arg0: i32, %arg1: i32) -> (i32, i32, i32, i32, i32) {
    %c0_i32 = arith.constant 0 : i32
    %c0_i32_0 = arith.constant 0 : i32
    %c0_i32_1 = arith.constant 0 : i32
    %c0_i32_2 = arith.constant 0 : i32
    return %arg0, %arg1, %c0_i32, %c0_i32_0, %c0_i32_1 : i32, i32, i32, i32, i32
  }
}

</mosaic_0001>

<bundles_post_ra>
// kernel: tpu_custom_call.1
= control target key start
LH: loop header
LB: loop body
LE: loop exit
PB: predicated region body
PF: predicated region fallthrough
CT: control target
= control target key end

     0   :  { %8 = vsyncpa [#allocation3], 0  ;;  %s857_s0 = inlined_call_operand.vmem [shape: f32[2,64,32], index: 0, kind: input, shape index: {}]   ;;  %s858_s1 = inlined_call_operand.vmem [shape: f32[32,256], index: 1, kind: input, shape index: {}]   ;;  %s859_s2 = inlined_call_operand.vmem [shape: f32[1,256], index: 2, kind: input, shape index: {}]   ;;  %s860_s3 = inlined_call_operand.hbm [shape: f32[2,8,2,8,128], index: 3, kind: output, shape index: {}]  }
   0x1   :  { %10 = vsyncpa [#allocation3 + $0x1], 0  ;;  %s684_s12 = smov 0   ;;  %s686_s13 = smov 0  }
   0x2   :  { %s688_s14 = smov 0   ;;  %s690_s15 = smov 0  }
   0x3   :  { %s692_s16 = smov 0   ;;  %s694_s17 = smov 0  }
   0x4 LB: > { %s479_s18 = sadd.s32 4294967295, %s658_s17   ;;  %s480_s19 = sadd.s32 4294967294, %s658_s17   ;;  %s658_s17 = sphi %s694_s17, %s16_s17   ;;  %s654_s16 = sphi %s692_s16, %s867_s16   ;;  %s650_s15 = sphi %s690_s15, %s866_s15   ;;  %s646_s14 = sphi %s688_s14, %s865_s14   ;;  %s642_s13 = sphi %s686_s13, %s864_s13   ;;  %s638_s12 = sphi %s684_s12, %s863_s12  }
   0x5   : > { %s28_s20 = sadd.s32 1, %s654_s16  ;;  %s107_s21 = sadd.s32 1, %s646_s14 }
   0x6   : > { %p30_p0 = scmp.ge.s32.totalorder %s28_s20, 2  ;;  %p117_p1 = scmp.ne.s32.totalorder %s646_s14, %s642_s13 }
   0x7   : > { %p118_p2 = scmp.eq.s32.totalorder %s479_s18, 1  ;;  %p123_p3 = scmp.ne.s32.totalorder %s642_s13, %s638_s12 }
   0x8   : > { %s869_s20 = smov (%p30_p0, %s28_s20), 0  ;;  %p124_p5 = scmp.eq.s32.totalorder %s480_s19, 1 }
   0x9   : > { %p724_p4 = por %p118_p2, %p117_p1  ;;  %s102_s23 = ssub.s32 %s654_s16, %s869_s20 }
   0xa   : > { %p483_p6 = scmp.ge.s32.totalorder %s658_s17, 1  ;;  %p105_p7 = scmp.eq.s32.totalorder %s102_s23, 0 }
   0xb   : > { %p731_p8 = por %p124_p5, %p123_p3  ;;  %p161_p9 = scmp.lt.s32.totalorder %s658_s17, 3 }
   0xc   : > { %s737_s25 = scalar_select %p105_p7, %s646_s14, %s107_s21  }
   0xd   : > { %p162_p10 = pnand %p483_p6, %p161_p9 }
   0xe   : > { %v209_v0 = vld [vmem:[%s858_s1 + $0x8] sm:$0xff] (!%p162_p10)  ;;  %v211_v1 = vld [vmem:[%s858_s1 + $0x18] sm:$0xff] (!%p162_p10)  ;;  %v208_v2 = vld [vmem:[%s858_s1] sm:$0xff] (!%p162_p10)  ;;  %p190_p11 = scmp.lt.s32.totalorder (!%p162_p10), %s650_s15, 1  ;;  %v660_v7 = vmov (!%p162_p10), 0.0   ;;  %vm228_vm0 = vcmask (!%p162_p10), 261120   ;;  %v218_v21 = vlaneseq (!%p162_p10) }
   0xf   : > { %165 = sbr.rel (%p162_p10) target bundleno = 270 (0x10e), region = 32  ;;  %v510_v3 = vpack.c.bf16 (!%p162_p10), %v211_v1, %v209_v0  ;;  %v210_v4 = vld [vmem:[%s858_s1 + $0x10] sm:$0xff] (!%p162_p10)  ;;  %v213_v5 = vld [vmem:[%s858_s1 + $0x28] sm:$0xff] (!%p162_p10)  ;;  %v215_v6 = vld [vmem:[%s858_s1 + $0x38] sm:$0xff] (!%p162_p10)  ;;  %317 = vmatprep.mubr.f32.mxu0 (!%p162_p10), %v660_v7  ;;  %341 = vmatprep.mubr.f32.mxu1 (!%p162_p10), %v660_v7  ;;  %s186_s30 = sand.u32 (!%p162_p10), 1, %s642_s13  }
  0x10   : > { %v512_v8 = vpack.c.bf16 (!%p162_p10), %v210_v4, %v208_v2  ;;  %v514_v9 = vpack.c.bf16 (!%p162_p10), %v215_v6, %v213_v5  ;;  %v212_v10 = vld [vmem:[%s858_s1 + $0x20] sm:$0xff] (!%p162_p10)  ;;  %v214_v11 = vld [vmem:[%s858_s1 + $0x30] sm:$0xff] (!%p162_p10)  ;;  %v219_v22 = vshrl.u32 (!%p162_p10), %v218_v21, 7  ;;  %s484_s6 = sshll.u32 (!%p162_p10), %s186_s30, 7  ;;  %s509_s8 = sshll.u32 (!%p162_p10), %s650_s15, 11 }
  0x11   : > { %511 = vmatprep.subr.bf16.mxu0 (!%p162_p10), %v510_v3  ;;  %518 = vmatprep.subr.bf16.mxu1 (!%p162_p10), %v510_v3  ;;  %v516_v12 = vpack.c.bf16 (!%p162_p10), %v214_v11, %v212_v10  ;;  %v216_v24 = vld [vmem:[%s859_s2] sm:$0x3] (!%p162_p10)  ;;  %s782_s7 = scalar_lea.vmem (!%p162_p10), [#allocation2], %s484_s6  ;;  %s811_s18 = scalar_lea.sflag (!%p162_p10), [#allocation3], %s186_s30 }
  0x12   : > { %513 = vmatpush1.bf16.msra.mxu0 (!%p162_p10), %v512_v8  ;;  %520 = vmatpush1.bf16.msra.mxu1 (!%p162_p10), %v512_v8  ;;  %v220_v23 = vsub.s32 (!%p162_p10), 0, %v219_v22  ;;  %v224_v25 = vsub.s32 (!%p162_p10), 1, %v219_v22  ;;  %s400_s9 = sshll.u32 (!%p162_p10), %s782_s7, 4  ;;  %s661_s21 = smov (!%p162_p10), [#allocation2]   ;;  %s803_s9 = int_to_ptr.vmem [resolvable:$true] %s400_s9 }
  0x13   : > { %515 = vmatprep.subr.bf16.mxu0 (!%p162_p10), %v514_v9  ;;  %519 = vmatprep.subr.bf16.mxu1 (!%p162_p10), %v514_v9  ;;  %s580_s19 = scalar_lea.vmem (!%p162_p10), %s803_s9, 2048 }
  0x14   : > { %v221_v26 = vrot.slane (!%p162_p10), %v216_v24, %v220_v23  ;;  %v225_v27 = vrot.slane (!%p162_p10), %v216_v24, %v224_v25  ;;  %p581_p12 = scmp.ne.s32.totalorder (!%p162_p10), %s803_s9, %s580_s19 }
  0x16   : > { %s191_s23 = scalar_select %p190_p11, %s650_s15, 1  ;;  %517 = vmatpush1.bf16.msra.mxu0 %v516_v12  ;;  %521 = vmatpush1.bf16.msra.mxu1 %v516_v12 }
  0x17   : > { %s801_s15 = scalar_lea.hbm %s860_s3, %s509_s8  ;;  %p582_p13 = pnand %p581_p12, %p724_p4 }
  0x18   : > { %s508_s26 = sshll.u32 %s191_s23, 6  ;;  %s584_s23 = sshll.u32 %s661_s21, 4  ;;  %s585_s23 = int_to_ptr.vmem [resolvable:$false] %s584_s23 }
  0x19   : > { %s197_s29 = scalar_lea.vmem %s857_s0, %s508_s26  ;;  %p583_p0 = pneg %p582_p13 }
  0x1a   : > { %v200_v13 = vld [vmem:[%s197_s29] sm:$0xff]  ;;  %v201_v15 = vld [vmem:[%s197_s29 + $0x8] sm:$0xff]  ;;  %v202_v17 = vld [vmem:[%s197_s29 + $0x10] sm:$0xff]  ;;  %s586_s26 = scalar_lea.vmem %s585_s23, 4096  ;;  %p587_p1 = scmp.lt.s32.totalorder %s803_s9, %s585_s23 }
  0x1b   : > { %v204_v14 = vld [vmem:[%s197_s29 + $0x20] sm:$0xff]  ;;  %487 = vmatmul.mubr.msk.f32.vlgmr.msra.gmra.mrb[0].mxu0 %vm228_vm0, %v200_v13  ;;  %v205_v16 = vld [vmem:[%s197_s29 + $0x28] sm:$0xff]  ;;  %v206_v18 = vld [vmem:[%s197_s29 + $0x30] sm:$0xff]  ;;  %p588_p2 = scmp.lt.s32.totalorder %s586_s26, %s580_s19 }
  0x1c   : > { %491 = vmatmul.mubr.msk.f32.vlgmr.msra.gmra.mrb[0].mxu1 %vm228_vm0, %v204_v14  ;;  %323 = vmatprep.mubr.f32.mxu0 %v660_v7  ;;  %v203_v19 = vld [vmem:[%s197_s29 + $0x18] sm:$0xff] }
  0x1d   : > { %347 = vmatprep.mubr.f32.mxu1 %v660_v7  ;;  %v207_v20 = vld [vmem:[%s197_s29 + $0x38] sm:$0xff]  ;;  %p589_p3 = por %p588_p2, %p587_p1 }
  0x1f   : > { %488 = vmatmul.mubr.msk.f32.gmra.mrb[2].mxu0 %vm228_vm0, %v201_v15  ;;  %p590_p5 = pnand %p589_p3, %p583_p0 }
  0x20   : > { %492 = vmatmul.mubr.msk.f32.gmra.mrb[2].mxu1 %vm228_vm0, %v205_v16  ;;  %329 = vmatprep.mubr.f32.mxu0 %v660_v7 }
  0x21   : > { %353 = vmatprep.mubr.f32.mxu1 %v660_v7 }
  0x23   : > { %489 = vmatmul.mubr.msk.f32.gmra.mrb[4].mxu0 %vm228_vm0, %v202_v17 }
  0x24   : > { %493 = vmatmul.mubr.msk.f32.gmra.mrb[4].mxu1 %vm228_vm0, %v206_v18  ;;  %335 = vmatprep.mubr.f32.mxu0 %v660_v7 }
  0x25   : > { %359 = vmatprep.mubr.f32.mxu1 %v660_v7 }
  0x27   : > { %490 = vmatmul.mubr.msk.f32.gmra.mrb[6].mxu0 %vm228_vm0, %v203_v19 }
  0x28   : > { %494 = vmatmul.mubr.msk.f32.gmra.mrb[6].mxu1 %vm228_vm0, %v207_v20 }
  0xee   : > { %v319_v28 = vpop.f32.mrb[0].mxu0 }
  0xef   : > { %v343_v29 = vpop.f32.mrb[0].mxu1  ;;  %v320_v30 = vadd.f32 %v319_v28, %v221_v26  ;;  %v321_v32 = vpop.f32.mrb[1].mxu0 }
  0xf0   : > { %v344_v31 = vadd.f32 %v343_v29, %v221_v26  ;;  %v345_v33 = vpop.f32.mrb[1].mxu1  ;;  %v322_v34 = vadd.f32 %v321_v32, %v225_v27 }
  0xf1   : > { %v346_v35 = vadd.f32 %v345_v33, %v225_v27  ;;  %366 = vst [vmem:[%s782_s7] sm:$0xff] %v320_v30 }
  0xf2   : > { %370 = vst [vmem:[%s782_s7 + $0x40] sm:$0xff] %v344_v31  ;;  %495 = vst [vmem:[%s782_s7 + $0x8] sm:$0xff] %v322_v34  ;;  %v325_v36 = vpop.f32.mrb[2].mxu0 }
  0xf3   : > { %499 = vst [vmem:[%s782_s7 + $0x48] sm:$0xff] %v346_v35  ;;  %v349_v37 = vpop.f32.mrb[2].mxu1  ;;  %v326_v38 = vadd.f32 %v325_v36, %v221_v26  ;;  %v327_v40 = vpop.f32.mrb[3].mxu0 }
  0xf4   : > { %v350_v39 = vadd.f32 %v349_v37, %v221_v26  ;;  %v351_v41 = vpop.f32.mrb[3].mxu1  ;;  %v328_v42 = vadd.f32 %v327_v40, %v225_v27 }
  0xf5   : > { %v352_v43 = vadd.f32 %v351_v41, %v225_v27  ;;  %367 = vst [vmem:[%s782_s7 + $0x10] sm:$0xff] %v326_v38 }
  0xf6   : > { %371 = vst [vmem:[%s782_s7 + $0x50] sm:$0xff] %v350_v39  ;;  %496 = vst [vmem:[%s782_s7 + $0x18] sm:$0xff] %v328_v42  ;;  %v331_v44 = vpop.f32.mrb[4].mxu0 }
  0xf7   : > { %500 = vst [vmem:[%s782_s7 + $0x58] sm:$0xff] %v352_v43  ;;  %v355_v45 = vpop.f32.mrb[4].mxu1  ;;  %v332_v46 = vadd.f32 %v331_v44, %v221_v26  ;;  %v333_v48 = vpop.f32.mrb[5].mxu0 }
  0xf8   : > { %v356_v47 = vadd.f32 %v355_v45, %v221_v26  ;;  %v357_v49 = vpop.f32.mrb[5].mxu1  ;;  %v334_v50 = vadd.f32 %v333_v48, %v225_v27 }
  0xf9   : > { %v358_v51 = vadd.f32 %v357_v49, %v225_v27  ;;  %368 = vst [vmem:[%s782_s7 + $0x20] sm:$0xff] %v332_v46 }
  0xfa   : > { %372 = vst [vmem:[%s782_s7 + $0x60] sm:$0xff] %v356_v47  ;;  %497 = vst [vmem:[%s782_s7 + $0x28] sm:$0xff] %v334_v50  ;;  %v337_v52 = vpop.f32.mrb[6].mxu0 }
  0xfb   : > { %501 = vst [vmem:[%s782_s7 + $0x68] sm:$0xff] %v358_v51  ;;  %v361_v53 = vpop.f32.mrb[6].mxu1  ;;  %v338_v54 = vadd.f32 %v337_v52, %v221_v26  ;;  %v339_v56 = vpop.f32.mrb[7].mxu0 }
  0xfc   : > { %v362_v55 = vadd.f32 %v361_v53, %v221_v26  ;;  %v363_v57 = vpop.f32.mrb[7].mxu1  ;;  %v340_v58 = vadd.f32 %v339_v56, %v225_v27 }
  0xfd   : > { %v364_v59 = vadd.f32 %v363_v57, %v225_v27  ;;  %369 = vst [vmem:[%s782_s7 + $0x30] sm:$0xff] %v338_v54 }
  0xfe   : > { %373 = vst [vmem:[%s782_s7 + $0x70] sm:$0xff] %v362_v55  ;;  %498 = vst [vmem:[%s782_s7 + $0x38] sm:$0xff] %v340_v58 }
  0xff   : > { %502 = vst [vmem:[%s782_s7 + $0x78] sm:$0xff] %v364_v59 }
 0x100   : > { %593 = shalt.err (!%p590_p5)
}
 0x101   : > { %s594_s27 = scalar_lea.hbm %s801_s15, 2048  ;;  %s598_s30 = scalar_lea.hbm %s860_s3, 4096 }
 0x102   : > { %p595_p6 = scmp.ne.s32.totalorder %s801_s15, %s594_s27  ;;  %p599_p10 = scmp.lt.u32.totalorder %s801_s15, %s860_s3 }
 0x103   : > { %p600_p11 = scmp.lt.u32.totalorder %s598_s30, %s594_s27  ;;  %p602_p13 = scmp.lt.u32.totalorder %s594_s27, %s801_s15 }
 0x104   : > { %p596_p7 = pnand %p595_p6, %p724_p4 }
 0x105   : > { %p601_p12 = por %p600_p11, %p599_p10 }
 0x106   : > { %p597_p9 = pneg %p596_p7 }
 0x107   : > { %p603_p0 = por %p602_p13, %p601_p12 }
 0x109   : > { %p604_p1 = pnand %p603_p0, %p597_p9 }
 0x10b   : > { %607 = shalt.err (!%p604_p1)
}
 0x10c   : > { %s662_s6 = smov 128   ;;  %s663_s7 = smov 8  }
 0x10d   : > { %522 = dma.vmem_to_hbm [thread:$0]  (%p724_p4), %s803_s9, 2048, %s801_s15, %s811_s18, %s662_s6, %s662_s6, %s663_s7  }
 0x10e PF: > { %p528_p2 = scmp.ge.s32.totalorder %s658_s17, 2  ;;  %s415_s8 = sand.u32 1, %s638_s12  }
 0x10f   : > { %s416_s10 = scalar_lea.sflag [#allocation3], %s415_s8 }
 0x110   : > { %p525_p3 = pnand %p528_p2, %p731_p8 }
 0x112   : > { %633 = dma.done.wait (!%p525_p3), %s416_s10, 2048  }
 0x113   : > { %635 = vsyncadd (!%p525_p3), %s416_s10, 4294965248  ;;  %s16_s17 = sadd.s32 1, %s658_s17   ;;  %s863_s12 = smov %s642_s13 }
 0x114   : > { %p13_p5 = scmp.ge.s32.totalorder %s16_s17, 4   ;;  %s864_s13 = smov %s646_s14 }
 0x115   : > { %s865_s14 = smov %s737_s25  ;;  %s866_s15 = smov %s654_s16 }
 0x116   : > { %s867_s16 = smov %s869_s20  ;;  %15 = sbr.rel (!%p13_p5) target bundleno = 4 (0x4), region = 68 }
 0x11d   :  { %421 = vsyncpa [#allocation3], 1 }
 0x11e   :  { %423 = vsyncpa [#allocation3 + $0x1], 1 }

</bundles_post_ra>
